<compile_context>
chip_gen: v7x
topology: tpu7x:2x2x1
jax: 0.10.0
libtpu: 0.0.40
codegen_flags: <defaults>
</compile_context>

<pallas_src>
import functools

import jax
import jax.numpy as jnp
from jax.experimental import pallas as pl
from jax.experimental.pallas import tpu as pltpu

LANES = 128


# ---------------------------------------------------------------------------
# Kernel body (shared by the 2-D and 1-D paths)
# ---------------------------------------------------------------------------
def _hardswish_kernel(x_ref, o_ref):
    x = x_ref[...]
    # Upcast sub-32-bit floats to f32 for the arithmetic (torch-style opmath);
    # free — this kernel is DMA-bound and the VPU has huge slack.
    if jnp.issubdtype(x.dtype, jnp.floating) and jnp.dtype(x.dtype).itemsize < 4:
        xf = x.astype(jnp.float32)
    else:
        xf = x
    # relu6(x + 3) / 6  ==  clamp(x + 3, 0, 6) * (1/6)
    inner = jnp.clip(xf + 3.0, 0.0, 6.0) * (1.0 / 6.0)
    o_ref[...] = (xf * inner).astype(o_ref.dtype)


def _hardswish_plain(x: jax.Array) -> jax.Array:
    """Plain-JAX fallback for tiny tensors (<128 elements)."""
    xf = x.astype(jnp.float32) if jnp.issubdtype(x.dtype, jnp.floating) and \
        jnp.dtype(x.dtype).itemsize < 4 else x
    return (xf * jnp.clip(xf + 3.0, 0.0, 6.0) * (1.0 / 6.0)).astype(x.dtype)


# ---------------------------------------------------------------------------
# Generation-aware block-size / VMEM-limit selection
# ---------------------------------------------------------------------------
@functools.lru_cache(maxsize=1)
def _block_config():
    kind = ""
    try:
        kind = jax.devices()[0].device_kind.lower()
    except Exception:
        pass

    if "v7" in kind:
        block_bytes = 8 << 20     # 3.2 TB/s HBM: keep grid-step overhead ~6%
    elif "v6" in kind:
        block_bytes = 6 << 20
    elif "v5" in kind:
        block_bytes = 3 << 20     # v5e scoped-VMEM default is only 16 MiB
    else:
        block_bytes = 4 << 20     # unknown chip: conservative

    # in + out, each double-buffered, plus headroom for the compiler.
    vmem_limit = 4 * block_bytes + (16 << 20)

    # Never ask for more than ~75% of physical VMEM (v7x has only 64 MiB/TC).
    try:
        cap = pltpu.get_tpu_info().vmem_capacity_bytes
        vmem_limit = min(vmem_limit, int(cap * 3 // 4))
    except Exception:
        pass

    return block_bytes, int(vmem_limit)


# ---------------------------------------------------------------------------
# Pallas wrappers
# ---------------------------------------------------------------------------
def _hardswish_2d(x2d: jax.Array, block_bytes: int, vmem_limit: int) -> jax.Array:
    """Pallas kernel over a lane-dense (rows, 128) slab (n % 128 == 0 path)."""
    rows, lanes = x2d.shape
    itemsize = jnp.dtype(x2d.dtype).itemsize
    # Native packed sublane tile: f32 -> 8 rows, bf16/f16 -> 16, int8 -> 32.
    sublane_mult = max(8, 32 // itemsize)
    target_rows = max(sublane_mult, block_bytes // (lanes * itemsize))
    target_rows -= target_rows % sublane_mult
    block_rows = min(target_rows, rows)
    grid = (pl.cdiv(rows, block_rows),)

    return pl.pallas_call(
        _hardswish_kernel,
        out_shape=jax.ShapeDtypeStruct((rows, lanes), x2d.dtype),
        grid=grid,
        in_specs=[pl.BlockSpec((block_rows, lanes), lambda i: (i, 0))],
        out_specs=pl.BlockSpec((block_rows, lanes), lambda i: (i, 0)),
        compiler_params=pltpu.CompilerParams(
            dimension_semantics=("parallel",),
            vmem_limit_bytes=vmem_limit),
    )(x2d)


def _hardswish_1d(x1d: jax.Array, block_bytes: int, vmem_limit: int) -> jax.Array:
    """Single-pass 1-D kernel for ragged sizes (n % 128 != 0).

    Blocks are lane-aligned (multiples of 128); Pallas masks the partial
    trailing block, so no host-side padding or concatenation is needed and
    HBM traffic stays at exactly one read + one write of the tensor.
    """
    n = x1d.shape[0]
    itemsize = jnp.dtype(x1d.dtype).itemsize
    target = max(LANES, (block_bytes // itemsize) // LANES * LANES)
    block_n = min(target, n)  # full-extent block is legal when n < target
    grid = (pl.cdiv(n, block_n),)

    return pl.pallas_call(
        _hardswish_kernel,
        out_shape=jax.ShapeDtypeStruct((n,), x1d.dtype),
        grid=grid,
        in_specs=[pl.BlockSpec((block_n,), lambda i: (i,))],
        out_specs=pl.BlockSpec((block_n,), lambda i: (i,)),
        compiler_params=pltpu.CompilerParams(
            dimension_semantics=("parallel",),
            vmem_limit_bytes=vmem_limit),
    )(x1d)


def hard_swish(x: jax.Array) -> jax.Array:
    """Elementwise hardswish: x * relu6(x + 3) / 6. Matches torch semantics."""
    orig_shape = x.shape
    n = x.size
    if n == 0:
        return x

    block_bytes, vmem_limit = _block_config()
    x_flat = x.reshape(-1)

    if n < LANES:
        # Not worth a kernel launch.
        return _hardswish_plain(x_flat).reshape(orig_shape)

    if n % LANES == 0:
        out = _hardswish_2d(x_flat.reshape(n // LANES, LANES),
                            block_bytes, vmem_limit)
    else:
        out = _hardswish_1d(x_flat, block_bytes, vmem_limit)

    return out.reshape(orig_shape)


class HardSwish:
    """Mirror of the PyTorch module; `inplace` is a no-op under JAX."""

    def __init__(self, inplace: bool = False) -> None:
        # JAX arrays are immutable; returned value is identical either way.
        self.inplace = inplace

    def __call__(self, x: jax.Array) -> jax.Array:
        return hard_swish(x)


if __name__ == "__main__":
    key = jax.random.PRNGKey(0)
    # NCHW input, small shape: batch=2, channels=4, spatial=16x16
    x = jax.random.normal(key, (2, 4, 16, 16), dtype=jnp.float32) * 4.0

    m = HardSwish()
    y = jax.block_until_ready(m(x))

    # reference check in plain JAX (f32)
    ref = x * jnp.clip(x + 3.0, 0.0, 6.0) / 6.0
    assert y.shape == x.shape and y.dtype == x.dtype
    assert jnp.allclose(y, ref, atol=1e-6, rtol=1e-6)

    # bf16 path (exercises in-kernel f32 opmath upcast)
    xb = x.astype(jnp.bfloat16)
    yb = jax.block_until_ready(m(xb))
    assert yb.shape == xb.shape and yb.dtype == xb.dtype
    assert jnp.allclose(yb.astype(jnp.float32), ref, atol=5e-2, rtol=5e-2)

    print("KERNEL_OK")
</pallas_src>

<mosaic_0001>
module attributes {stable_mosaic.version = 11 : i64} {
  func.func @_hardswish_kernel(%arg0: i32, %arg1: memref<16x128xf32, #tpu.memory_space<vmem>>, %arg2: memref<16x128xf32, #tpu.memory_space<vmem>>) attributes {dimension_semantics = [#tpu.dimension_semantics<parallel>], iteration_bounds = array<i64: 1>, scalar_prefetch = 0 : i64, scratch_operands = 0 : i64, tpu.core_type = #tpu.core_type<tc>, window_params = [{transform_indices = @transform_0, window_bounds = array<i64: 16, 128>}, {transform_indices = @transform_1, window_bounds = array<i64: 16, 128>}]} {
    %c0 = arith.constant 0 : index
    %c0_0 = arith.constant 0 : index
    %0 = vector.load %arg1[%c0, %c0_0] : memref<16x128xf32, #tpu.memory_space<vmem>>, vector<16x128xf32>
    %cst = arith.constant 3.000000e+00 : f32
    %1 = vector.broadcast %cst : f32 to vector<16x128xf32>
    %2 = arith.addf %0, %1 : vector<16x128xf32>
    %cst_1 = arith.constant 0.000000e+00 : f32
    %cst_2 = arith.constant 6.000000e+00 : f32
    %3 = vector.broadcast %cst_1 : f32 to vector<16x128xf32>
    %4 = arith.maximumf %3, %2 : vector<16x128xf32>
    %5 = vector.broadcast %cst_2 : f32 to vector<16x128xf32>
    %6 = arith.minimumf %5, %4 : vector<16x128xf32>
    %cst_3 = arith.constant 0.166666672 : f32
    %7 = vector.broadcast %cst_3 : f32 to vector<16x128xf32>
    %8 = arith.mulf %6, %7 : vector<16x128xf32>
    %9 = arith.mulf %0, %8 : vector<16x128xf32>
    %c0_4 = arith.constant 0 : index
    %c0_5 = arith.constant 0 : index
    %10 = vector.load %arg2[%c0_4, %c0_5] : memref<16x128xf32, #tpu.memory_space<vmem>>, vector<16x128xf32>
    tpu.vector_store %arg2[%c0_4, %c0_5], %9 {strides = array<i32>} : memref<16x128xf32, #tpu.memory_space<vmem>>, vector<16x128xf32>,
    return
  }
  func.func @transform_0(%arg0: i32) -> (i32, i32) {
    %c0_i32 = arith.constant 0 : i32
    %c0_i32_0 = arith.constant 0 : i32
    return %arg0, %c0_i32 : i32, i32
  }
  func.func @transform_1(%arg0: i32) -> (i32, i32) {
    %c0_i32 = arith.constant 0 : i32
    %c0_i32_0 = arith.constant 0 : i32
    return %arg0, %c0_i32 : i32, i32
  }
}

</mosaic_0001>

<bundles_post_ra>
// kernel: tpu_custom_call.1
= control target key start
LH: loop header
LB: loop body
LE: loop exit
PB: predicated region body
PF: predicated region fallthrough
CT: control target
= control target key end

     0   :  { %6 = vsyncpa [#allocation3], 0  ;;  %s150_s0 = inlined_call_operand.hbm [shape: f32[16,128], index: 0, kind: input, shape index: {}]   ;;  %s151_s1 = inlined_call_operand.hbm [shape: f32[16,128], index: 1, kind: output, shape index: {}]  }
   0x1   :  { %7 = vsyncpa [#allocation4], 0  ;;  %s106_s6 = smov [#allocation2]   ;;  %s58_s10 = scalar_lea.hbm %s150_s0, 256 }
   0x2   :  { %s13_s7 = sshll.u32 %s106_s6, 4  ;;  %p59_p0 = scmp.ne.s32.totalorder %s150_s0, %s58_s10  ;;  %s14_s7 = int_to_ptr.vmem [resolvable:$true] %s13_s7 }
   0x3   :  { %p62_p1 = scmp.lt.u32.totalorder %s58_s10, %s150_s0 }
   0x5   :  { %p64_p2 = pnand %p62_p1, %p59_p0 }
   0x7   :  { %67 = shalt.err (!%p64_p2)
}
   0x8   :  { %s68_s15 = scalar_lea.vmem %s14_s7, 256  ;;  %p73_p4 = scmp.lt.s32.totalorder %s14_s7, %s14_s7 }
   0x9   :  { %p69_p3 = scmp.ne.s32.totalorder %s14_s7, %s68_s15  ;;  %p74_p5 = scmp.lt.s32.totalorder %s68_s15, %s68_s15 }
   0xb   :  { %p75_p6 = por %p74_p5, %p73_p4 }
   0xd   :  { %p76_p7 = pnand %p75_p6, %p69_p3 }
   0xf   :  { %79 = shalt.err (!%p76_p7)
}
  0x10   :  { %s107_s16 = smov 128   ;;  %s108_s17 = smov 8  }
  0x11   :  { %19 = dma.hbm_to_vmem [thread:$0]  %s150_s0, 256, %s14_s7, [#allocation3], %s107_s16, %s107_s16, %s108_s17  }
  0x12   :  { %102 = dma.done.wait [#allocation3], 256  }
  0x13   :  { %103 = vsyncadd [#allocation3], 4294967040  ;;  %v23_v0 = vld [vmem:[#allocation2] sm:$0xff]  ;;  %v24_v1 = vld [vmem:[#allocation2 + $0x8] sm:$0xff]  ;;  %s109_s20 = smov [#allocation5]  }
  0x14   :  { %v25_v2 = vadd.f32 3.0, %v23_v0  ;;  %v26_v3 = vadd.f32 3.0, %v24_v1  ;;  %s42_s21 = sshll.u32 %s109_s20, 4  ;;  %s43_s21 = int_to_ptr.vmem [resolvable:$true] %s42_s21 }
  0x15   :  { %s80_s0 = scalar_lea.vmem %s43_s21, 256  ;;  %p85_p9 = scmp.lt.s32.totalorder %s43_s21, %s43_s21 }
  0x16   :  { %v27_v4 = vmax.f32 %v25_v2, 0.0  ;;  %v28_v5 = vmax.f32 %v26_v3, 0.0  ;;  %p81_p8 = scmp.ne.s32.totalorder %s43_s21, %s80_s0  ;;  %p86_p10 = scmp.lt.s32.totalorder %s80_s0, %s80_s0 }
  0x18   :  { %v29_v6 = vmin.f32 %v27_v4, 6.0  ;;  %v30_v7 = vmin.f32 %v28_v5, 6.0  ;;  %p87_p11 = por %p86_p10, %p85_p9 }
  0x1a   :  { %v31_v8 = vmul.f32 0.16666667, %v29_v6  ;;  %v32_v9 = vmul.f32 0.16666667, %v30_v7  ;;  %p88_p12 = pnand %p87_p11, %p81_p8 }
  0x1c   :  { %v33_v10 = vmul.f32 %v31_v8, %v23_v0  ;;  %v34_v11 = vmul.f32 %v32_v9, %v24_v1 }
  0x1e   :  { %35 = vst [vmem:[#allocation5] sm:$0xff] %v33_v10  ;;  %36 = vst [vmem:[#allocation5 + $0x8] sm:$0xff] %v34_v11 }
  0x1f   :  { %91 = shalt.err (!%p88_p12)
}
  0x20   :  { %s92_s24 = scalar_lea.hbm %s151_s1, 256 }
  0x21   :  { %p93_p13 = scmp.ne.s32.totalorder %s151_s1, %s92_s24  ;;  %p96_p0 = scmp.lt.u32.totalorder %s92_s24, %s151_s1 }
  0x23   :  { %p98_p1 = pnand %p96_p0, %p93_p13 }
  0x25   :  { %101 = shalt.err (!%p98_p1)
}
  0x26   :  { %48 = dma.vmem_to_hbm [thread:$0]  %s43_s21, 256, %s151_s1, [#allocation4], %s107_s16, %s107_s16, %s108_s17  }
  0x27   :  { %104 = dma.done.wait [#allocation4], 256  }
  0x28   :  { %105 = vsyncadd [#allocation4], 4294967040 }
  0x29   :  { %52 = vsyncpa [#allocation3], 1 }
  0x2a   :  { %53 = vsyncpa [#allocation4], 1 }

</bundles_post_ra>
